<compile_context>
chip_gen: v5e
topology: v5e:2x2
jax: 0.10.0
libtpu: 0.0.40
codegen_flags: <defaults>
</compile_context>

<pallas_src>
import functools
import math

import jax
import jax.numpy as jnp
from jax.experimental import pallas as pl
from jax.experimental.pallas import tpu as pltpu


_W_CAP = 2048      # max packed lane width (<= 16 f32 vregs per source row)
_SUBLANE = 8       # f32 sublane tile


def _gmm_bcast_kernel(chunk, rows_ref, pi_ref, mu_ref, sigma_ref):
    """Pure lane-dense broadcast-store.

    rows_ref  : (3, W) precomputed rows [softmax(pi); mu; sqrt(var)], lane-tiled.
    *_ref     : (TILE_P, W) output tiles (W a multiple of 128 -> unmasked vst).
    Stores go out in `chunk`-row blocks reusing one broadcast value, so the
    sublane broadcast never needs more than a handful of live vregs.
    """
    tile_p, w = pi_ref.shape
    n_full = tile_p // chunk
    rem = tile_p - n_full * chunk
    for idx, o_ref in enumerate((pi_ref, mu_ref, sigma_ref)):
        row = rows_ref[idx:idx + 1, :]                          # (1, W)
        if n_full:
            bc = jnp.broadcast_to(row, (chunk, w))              # reused each chunk
            for c in range(n_full):
                o_ref[c * chunk:(c + 1) * chunk, :] = bc
        if rem:
            o_ref[n_full * chunk:, :] = jnp.broadcast_to(row, (rem, w))


def _pack_geometry(k):
    """Return (k_pad, w, reps): lane-dense packing with w a multiple of 128.

    For k <= 128, find the smallest k_pad >= k with lcm(k_pad, 128) <= _W_CAP:
    zero (or minimal) lane padding, so every stored lane is a real output
    element on this write-bound kernel.  reps = w // k_pad batch rows are
    packed per 128*-lane row.  (reps is always a power of two.)
    """
    if k <= 128:
        k_pad = k
        while True:
            w = (k_pad * 128) // math.gcd(k_pad, 128)
            if w <= _W_CAP:
                break
            k_pad += 1
        return k_pad, w, w // k_pad
    k_pad = pl.cdiv(k, 128) * 128
    return k_pad, k_pad, 1


def gmm_forward(x, pi_param, mu_param, var_param, *, target_block_bytes=3 << 20):
    """Pallas implementation of GaussianMixture.forward.

    x         : (n, k, d)  -- only the batch size n is used (as in the module)
    pi_param  : (1, k, 1)
    mu_param  : (1, k, d)
    var_param : (1, k, d)
    returns   : (pi, mu, sigma), each (n, k), float32
    """
    n = x.shape[0]
    k = pi_param.shape[1]
    d = mu_param.shape[2]
    # torch forward relies on .squeeze(-1) collapsing the feature dim -> d == 1.
    assert d == 1, "GaussianMixture.forward only works for n_features == 1"

    k_pad, w, reps = _pack_geometry(k)

    # ---- tiny (1, k) parameter math, hoisted out of the kernel (review) -----
    pi_row = jax.nn.softmax(pi_param.reshape(1, k).astype(jnp.float32), axis=-1)
    mu_row = mu_param.reshape(1, k).astype(jnp.float32)
    sigma_row = jnp.sqrt(var_param.reshape(1, k).astype(jnp.float32))
    rows = jnp.concatenate([pi_row, mu_row, sigma_row], axis=0)        # (3, k)
    if k_pad > k:
        rows = jnp.pad(rows, ((0, 0), (0, k_pad - k)))                 # sliced away
    rows = jnp.tile(rows, (1, reps))                                   # (3, W)

    # ---- batch tiling over packed 128-lane rows ------------------------------
    p_rows = pl.cdiv(n, reps)                 # exactly the packed rows needed
    bytes_per_row = 3 * w * 4                 # f32, summed over the 3 outputs
    rows_per_block = max(
        _SUBLANE,
        (max(target_block_bytes, bytes_per_row * _SUBLANE) // bytes_per_row)
        // _SUBLANE * _SUBLANE)
    if p_rows < 2 * _SUBLANE:
        tile_p, num_tiles = p_rows, 1         # block == full array (legal, tiny n)
    else:
        # >= 2 tiles whenever splittable -> both TCs stream writebacks on v7x.
        num_tiles = max(2, pl.cdiv(p_rows, rows_per_block))
        tile_p = ((pl.cdiv(p_rows, num_tiles) + _SUBLANE - 1)
                  // _SUBLANE) * _SUBLANE     # (8, 128) rule
        num_tiles = pl.cdiv(p_rows, tile_p)   # ragged last block handled by Pallas

    # In-kernel store chunk: ~16 vregs of broadcast data live at a time.
    chunk = max(_SUBLANE, ((16 * 1024) // w) // _SUBLANE * _SUBLANE)

    out_sds = jax.ShapeDtypeStruct((p_rows, w), jnp.float32)
    out_spec = pl.BlockSpec((tile_p, w), lambda i: (i, 0))
    in_spec = pl.BlockSpec((3, w), lambda i: (0, 0))

    pi_s, mu_s, sigma_s = pl.pallas_call(
        functools.partial(_gmm_bcast_kernel, chunk),
        out_shape=(out_sds, out_sds, out_sds),
        grid=(num_tiles,),
        in_specs=[in_spec],
        out_specs=(out_spec, out_spec, out_spec),
        compiler_params=pltpu.CompilerParams(
            dimension_semantics=("parallel",),   # shard batch tiles across TCs
        ),
    )(rows)

    n_pad = p_rows * reps

    def _unpack(s):
        s = s.reshape(n_pad, k_pad)          # free row-major metadata reshape
        if n_pad == n and k_pad == k:
            return s                          # no slice, no copy
        return s[:n, :k]                      # only when a batch/lane tail exists

    return _unpack(pi_s), _unpack(mu_s), _unpack(sigma_s)


def gmm_forward_ref(x, pi_param, mu_param, var_param):
    """Pure-JAX reference mirroring the torch forward exactly."""
    n = x.shape[0]
    k = pi_param.shape[1]
    pi = jax.nn.softmax(jnp.squeeze(pi_param, -1), axis=-1)     # (1, k)
    pi = jnp.broadcast_to(pi, (n, k))
    mu = jnp.broadcast_to(jnp.squeeze(mu_param, -1), (n, k))    # d == 1
    sigma = jnp.broadcast_to(jnp.squeeze(jnp.sqrt(var_param), -1), (n, k))
    return pi, mu, sigma


# TODO(synk): fit()/_em() (the EM training loop) is not part of forward() and is
# not implemented here.

if __name__ == "__main__":
    n_components = 8
    n_features = 1          # forward() requires n_features == 1
    batch = 2

    key = jax.random.PRNGKey(0)
    k_mu, k_x = jax.random.split(key)

    pi_param = jnp.ones((1, n_components, 1), jnp.float32) / n_components
    mu_param = jax.random.normal(k_mu, (1, n_components, n_features), jnp.float32)
    var_param = jnp.ones((1, n_components, n_features), jnp.float32)
    x = jax.random.normal(k_x, (batch, n_components, n_features), jnp.float32)

    pi_o, mu_o, sg_o = gmm_forward(x, pi_param, mu_param, var_param)
    jax.block_until_ready((pi_o, mu_o, sg_o))
    pi_r, mu_r, sg_r = gmm_forward_ref(x, pi_param, mu_param, var_param)
    assert pi_o.shape == (batch, n_components)
    assert mu_o.shape == (batch, n_components)
    assert sg_o.shape == (batch, n_components)
    assert jnp.allclose(pi_o, pi_r, atol=1e-6)
    assert jnp.allclose(mu_o, mu_r, atol=1e-6)
    assert jnp.allclose(sg_o, sg_r, atol=1e-6)

    # Multi-tile grid + ragged last block + batch-tail slice (reps does not divide n).
    n_big = 3000
    x_big = jnp.zeros((n_big, n_components, n_features), jnp.float32)
    out_b = gmm_forward(x_big, pi_param, mu_param, var_param,
                        target_block_bytes=64 * 1024)
    jax.block_until_ready(out_b)
    ref_b = gmm_forward_ref(x_big, pi_param, mu_param, var_param)
    for o, r in zip(out_b, ref_b):
        assert o.shape == (n_big, n_components)
        assert jnp.allclose(o, r, atol=1e-6)

    # Copy-free path: reps | n -> the unpack is a pure metadata reshape,
    # and the forced >=2-tile grid exercises the chunked-store loop.
    n_even = 4096
    x_even = jnp.zeros((n_even, n_components, n_features), jnp.float32)
    out_e = gmm_forward(x_even, pi_param, mu_param, var_param)
    jax.block_until_ready(out_e)
    ref_e = gmm_forward_ref(x_even, pi_param, mu_param, var_param)
    for o, r in zip(out_e, ref_e):
        assert o.shape == (n_even, n_components)
        assert jnp.allclose(o, r, atol=1e-6)

    print("KERNEL_OK")
</pallas_src>

<mosaic_0001>
module attributes {stable_mosaic.version = 11 : i64} {
  func.func @_gmm_bcast_kernel(%arg0: i32, %arg1: memref<3x128xf32, #tpu.memory_space<vmem>>, %arg2: memref<1x128xf32, #tpu.memory_space<vmem>>, %arg3: memref<1x128xf32, #tpu.memory_space<vmem>>, %arg4: memref<1x128xf32, #tpu.memory_space<vmem>>) attributes {dimension_semantics = [#tpu.dimension_semantics<parallel>], iteration_bounds = array<i64: 1>, scalar_prefetch = 0 : i64, scratch_operands = 0 : i64, tpu.core_type = #tpu.core_type<tc>, window_params = [{pipeline_mode = #tpu.pipeline_mode<synchronous>, transform_indices = @transform_0, window_bounds = array<i64: 3, 128>}, {transform_indices = @transform_1, window_bounds = array<i64: 1, 128>}, {transform_indices = @transform_2, window_bounds = array<i64: 1, 128>}, {transform_indices = @transform_3, window_bounds = array<i64: 1, 128>}]} {
    %c0 = arith.constant 0 : index
    %c0_0 = arith.constant 0 : index
    %0 = vector.load %arg1[%c0, %c0_0] : memref<3x128xf32, #tpu.memory_space<vmem>>, vector<1x128xf32>
    %c0_1 = arith.constant 0 : index
    %c0_2 = arith.constant 0 : index
    %1 = vector.load %arg2[%c0_1, %c0_2] : memref<1x128xf32, #tpu.memory_space<vmem>>, vector<1x128xf32>
    tpu.vector_store %arg2[%c0_1, %c0_2], %0 {strides = array<i32>} : memref<1x128xf32, #tpu.memory_space<vmem>>, vector<1x128xf32>,
    %c1 = arith.constant 1 : index
    %c0_3 = arith.constant 0 : index
    %2 = vector.load %arg1[%c1, %c0_3] : memref<3x128xf32, #tpu.memory_space<vmem>>, vector<1x128xf32>
    %c0_4 = arith.constant 0 : index
    %c0_5 = arith.constant 0 : index
    %3 = vector.load %arg3[%c0_4, %c0_5] : memref<1x128xf32, #tpu.memory_space<vmem>>, vector<1x128xf32>
    tpu.vector_store %arg3[%c0_4, %c0_5], %2 {strides = array<i32>} : memref<1x128xf32, #tpu.memory_space<vmem>>, vector<1x128xf32>,
    %c2 = arith.constant 2 : index
    %c0_6 = arith.constant 0 : index
    %4 = vector.load %arg1[%c2, %c0_6] : memref<3x128xf32, #tpu.memory_space<vmem>>, vector<1x128xf32>
    %c0_7 = arith.constant 0 : index
    %c0_8 = arith.constant 0 : index
    %5 = vector.load %arg4[%c0_7, %c0_8] : memref<1x128xf32, #tpu.memory_space<vmem>>, vector<1x128xf32>
    tpu.vector_store %arg4[%c0_7, %c0_8], %4 {strides = array<i32>} : memref<1x128xf32, #tpu.memory_space<vmem>>, vector<1x128xf32>,
    return
  }
  func.func @transform_0(%arg0: i32) -> (i32, i32) {
    %c0_i32 = arith.constant 0 : i32
    %c0_i32_0 = arith.constant 0 : i32
    %c0_i32_1 = arith.constant 0 : i32
    return %c0_i32, %c0_i32_0 : i32, i32
  }
  func.func @transform_1(%arg0: i32) -> (i32, i32) {
    %c0_i32 = arith.constant 0 : i32
    %c0_i32_0 = arith.constant 0 : i32
    return %arg0, %c0_i32 : i32, i32
  }
  func.func @transform_2(%arg0: i32) -> (i32, i32) {
    %c0_i32 = arith.constant 0 : i32
    %c0_i32_0 = arith.constant 0 : i32
    return %arg0, %c0_i32 : i32, i32
  }
  func.func @transform_3(%arg0: i32) -> (i32, i32) {
    %c0_i32 = arith.constant 0 : i32
    %c0_i32_0 = arith.constant 0 : i32
    return %arg0, %c0_i32 : i32, i32
  }
}

</mosaic_0001>

<bundles_post_ra>
// kernel: tpu_custom_call.1
= control target key start
LH: loop header
LB: loop body
LE: loop exit
PB: predicated region body
PF: predicated region fallthrough
CT: control target
= control target key end

     0   :  { %9 = vsyncpa [#allocation3], 0  ;;  %s223_s0 = inlined_call_operand.hbm [shape: f32[3,128], index: 0, kind: input, shape index: {}]   ;;  %s224_s1 = inlined_call_operand.hbm [shape: f32[1,128], index: 1, kind: output, shape index: {0}]   ;;  %s225_s2 = inlined_call_operand.hbm [shape: f32[1,128], index: 2, kind: output, shape index: {1}]   ;;  %s226_s3 = inlined_call_operand.hbm [shape: f32[1,128], index: 3, kind: output, shape index: {2}]  }
   0x1   :  { %10 = vsyncpa [#allocation4], 0 }
   0x2   :  { %11 = vsyncpa [#allocation7], 0  ;;  %s17_s14 = sshll.u32 %s223_s0, 4  ;;  %s187_s15 = smov [#allocation2]   ;;  %s18_s14 = int_to_ptr.hbm [resolvable:$true] %s17_s14 }
   0x3   :  { %s19_s16 = sshll.u32 %s187_s15, 4  ;;  %s20_s16 = int_to_ptr.vmem [resolvable:$true] %s19_s16 }
   0x4   :  { %22 = dma.hbm_to_vmem [thread:$0]  %s18_s14, 64, %s20_s16, [#allocation3]  }
   0x5   :  { %181 = dma.done.wait [#allocation3], 64  }
   0x6   :  { %182 = vsyncadd [#allocation3], 4294967232  ;;  %s51_s19 = sshll.u32 %s225_s2, 4  ;;  %s188_s20 = smov [#allocation6]   ;;  %v29_v0 = vld [vmem:[#allocation2 + $0x1] sm:$0x1]  ;;  %s52_s19 = int_to_ptr.hbm [resolvable:$true] %s51_s19 }
   0x7   :  { %s49_s21 = sshll.u32 %s188_s20, 4  ;;  %s189_s22 = smov [#allocation5]   ;;  %v27_v1 = vld [vmem:[#allocation2] sm:$0x1]  ;;  %v31_v2 = vld [vmem:[#allocation2 + $0x2] sm:$0x1]  ;;  %s50_s21 = int_to_ptr.vmem [resolvable:$true] %s49_s21 }
   0x8   :  { %s38_s23 = sshll.u32 %s189_s22, 4  ;;  %s40_s0 = sshll.u32 %s224_s1, 4  ;;  %30 = vst [vmem:[#allocation6] sm:$0x1] %v29_v0  ;;  %s39_s23 = int_to_ptr.vmem [resolvable:$true] %s38_s23  ;;  %s41_s0 = int_to_ptr.hbm [resolvable:$true] %s40_s0 }
   0x9   :  { %s62_s28 = sshll.u32 %s226_s3, 4  ;;  %s190_s29 = smov [#allocation8]   ;;  %28 = vst [vmem:[#allocation5] sm:$0x1] %v27_v1  ;;  %s63_s28 = int_to_ptr.hbm [resolvable:$true] %s62_s28 }
   0xa   :  { %s60_s30 = sshll.u32 %s190_s29, 4  ;;  %32 = vst [vmem:[#allocation8] sm:$0x1] %v31_v2  ;;  %s61_s30 = int_to_ptr.vmem [resolvable:$true] %s60_s30 }
   0xb   :  { %54 = dma.vmem_to_hbm [thread:$0]  %s50_s21, 16, %s52_s19, [#allocation7]  }
   0xc   :  { %43 = dma.vmem_to_hbm [thread:$0]  %s39_s23, 16, %s41_s0, [#allocation4]  }
   0xd   :  { %65 = dma.vmem_to_hbm [thread:$0]  %s61_s30, 16, %s63_s28, [#allocation7]  }
   0xe   :  { %183 = dma.done.wait [#allocation4], 16  }
   0xf   :  { %184 = vsyncadd [#allocation4], 4294967280 }
  0x10   :  { %185 = dma.done.wait [#allocation7], 32  }
  0x11   :  { %186 = vsyncadd [#allocation7], 4294967264 }
  0x12   :  { %78 = vsyncpa [#allocation3], 1 }
  0x13   :  { %79 = vsyncpa [#allocation4], 1 }
  0x14   :  { %80 = vsyncpa [#allocation7], 1 }

</bundles_post_ra>
